<compile_context>
chip_gen: v5e
topology: v5e:2x2
jax: 0.10.0
libtpu: 0.0.40
codegen_flags: <defaults>
</compile_context>

<pallas_src>
import jax
import jax.numpy as jnp
import numpy as np
from jax import lax
from jax.experimental import pallas as pl
from jax.experimental.pallas import tpu as pltpu

HIDDEN = 32          # hidden_size (small stand-in for 768)
RANK = 128           # self.rank  (exactly one 128-wide lane row)
MIN_NORM = 1e-15     # self.min_norm
BALL_EPS = 4e-3      # self.eps[torch.float32] (geoopt f32 ball eps), c = 1
_MAXNORM = 1.0 - BALL_EPS


def _expmap0_on_ball(u):
    """PoincareBall.expmap0 (c=1) + projection onto the ball.

    Returns (emb, ||emb||^2).  Uses the identity ||tanh(||u||)/||u|| * u|| ==
    tanh(||u||), so ||emb||^2 needs no second cross-lane reduction.  All
    divides are exact (they act on (rows,1) columns, negligible cost)."""
    unorm = jnp.maximum(jnp.sqrt(jnp.sum(u * u, axis=-1, keepdims=True)), MIN_NORM)
    t = jnp.tanh(unorm)                                   # == ||gamma|| exactly
    gamma = u * (t / unorm)
    emb = jnp.where(t > _MAXNORM,
                    gamma * (_MAXNORM / jnp.maximum(t, MIN_NORM)),
                    gamma)
    y2 = jnp.minimum(t, _MAXNORM) ** 2                    # ||emb||^2, no re-reduce
    return emb, y2


# -------------------------------- kernel -------------------------------------
def matchsum_kernel(xd_ref, xs_ref, xc_ref, wd_ref, ws_ref, wc_ref, did_ref,
                    out_ref):
    """Fused MatchSum scoring.

    xd_ref  : (D_pad, H) bf16  doc CLS rows (padded to 8 sublanes)
    xs_ref  : (S_pad, H) bf16  summary CLS rows
    xc_ref  : (C_pad, H) bf16  candidate CLS rows
    w*_ref  : (H, R)     bf16  trans_d / trans_s / trans_c weights
    did_ref : (P, 1)     int32 doc index per pair row (out-of-range for padding)
    out_ref : (P, R)     f32   -dist2 per pair row broadcast across 128 lanes,
                               P = S_pad + C_pad (summary rows, then candidates).
    NOTE: padding rows compute finite garbage scores; the wrapper never reads
    them."""
    f32 = jnp.float32
    bf16 = jnp.bfloat16

    # trans_d / trans_s / trans_c: three row-sliced bf16 MXU dots, f32 accum.
    u_d = jnp.dot(xd_ref[...], wd_ref[...], preferred_element_type=f32)
    u_s = jnp.dot(xs_ref[...], ws_ref[...], preferred_element_type=f32)
    u_c = jnp.dot(xc_ref[...], wc_ref[...], preferred_element_type=f32)

    doc_emb, doc_y2 = _expmap0_on_ball(u_d)                      # (D_pad,R),(D_pad,1)
    emb, y2 = _expmap0_on_ball(jnp.concatenate([u_s, u_c], 0))   # (P,R), (P,1)

    n_pair = emb.shape[0]
    n_doc = doc_emb.shape[0]

    # Pair each summary/candidate row with its document: O(P*B) one-hot built
    # in-kernel from iota == doc_id (no O(P^2) selection matrix anywhere).
    lane = lax.broadcasted_iota(jnp.int32, (n_pair, n_doc), 1)
    onehot = jnp.where(lane == did_ref[...], 1.0, 0.0).astype(bf16)  # exact 0/1

    # Gather the doc embedding and take x2 straight from the doc y2 — the
    # (P,R) square + extra cross-lane reduction for x2 are gone.
    x_emb = jnp.dot(onehot, doc_emb.astype(bf16), preferred_element_type=f32)
    x2 = jnp.dot(onehot, doc_y2.astype(bf16), preferred_element_type=f32)   # (P,1)
    xy = -jnp.sum(x_emb * emb, axis=-1, keepdims=True)                      # <(-x),y>

    # dist2(x, y) from per-row scalars only:
    #   ||a*(-x) + b*y||^2 = a^2*x2 + 2ab*xy + b^2*y2   (mobius_add numerator)
    a = 1.0 + 2.0 * xy + y2
    b = 1.0 - x2
    num2 = a * a * x2 + 2.0 * a * b * xy + b * b * y2
    den = jnp.maximum(1.0 + 2.0 * xy + x2 * y2, MIN_NORM)
    m2 = jnp.maximum(num2 / (den * den), MIN_NORM * MIN_NORM)
    z = jnp.clip(jnp.sqrt(m2), 0.0, 1.0 - 1e-7)                  # artanh domain clamp
    # Exact artanh (no approx reciprocal: near z ~= 1 its error breaks tolerance).
    artanh = 0.5 * jnp.log((1.0 + z) / (1.0 - z))
    neg_d2 = -4.0 * artanh * artanh                              # (P,1) == -dist2

    # Lane-dense output: full 128-wide unmasked stores.  At production P, pack
    # scores into a (P/128, 128) slab instead of this 128x broadcast.
    out_ref[...] = jnp.broadcast_to(neg_d2, out_ref.shape)


# ------------------------------- wrapper --------------------------------------
def _pad_rows(x, mult=8):
    rows = x.shape[0]
    p = max(mult, ((rows + mult - 1) // mult) * mult)
    return jnp.pad(x, ((0, p - rows), (0, 0))), p


def matchsum_scores(cls_doc, cls_sum, cls_cand, w_d, w_s, w_c):
    batch, _ = cls_doc.shape
    cand_num = cls_cand.shape[0] // batch

    # Layout plumbing only (no compute hoisted out of the kernel): bf16 matmul
    # operands, rows padded to 8-sublane multiples.
    xd, d_pad = _pad_rows(cls_doc.astype(jnp.bfloat16))
    xs, s_pad = _pad_rows(cls_sum.astype(jnp.bfloat16))
    xc, c_pad = _pad_rows(cls_cand.astype(jnp.bfloat16))
    n_pair = s_pad + c_pad

    wd = w_d.astype(jnp.bfloat16)
    ws = w_s.astype(jnp.bfloat16)
    wc = w_c.astype(jnp.bfloat16)

    # Per-pair-row document index (vectorized host build, constant-folds under
    # jit).  Padding rows get an out-of-range id -> all-zero one-hot in kernel.
    doc_id = np.full((n_pair, 1), d_pad, np.int32)
    doc_id[:batch, 0] = np.arange(batch, dtype=np.int32)
    doc_id[s_pad:s_pad + batch * cand_num, 0] = np.repeat(
        np.arange(batch, dtype=np.int32), cand_num)
    doc_id = jnp.asarray(doc_id)

    # Single gridless invocation: every operand is tiny here.  At production
    # scale, add a 1-D row grid + dimension_semantics=("parallel",) and keep
    # the weights resident via a constant index_map (see header notes).
    vmem = pl.BlockSpec(memory_space=pltpu.MemorySpace.VMEM)
    out = pl.pallas_call(
        matchsum_kernel,
        out_shape=jax.ShapeDtypeStruct((n_pair, RANK), jnp.float32),
        in_specs=[vmem] * 7,
        out_specs=vmem,
    )(xd, xs, xc, wd, ws, wc, doc_id)

    summary_score = out[:batch, 0]                                   # (B,)
    score = out[s_pad:s_pad + batch * cand_num, 0].reshape(batch, cand_num)
    return {"score": score, "summary_score": summary_score}


# ------------------------ synthetic encoder (glue) ---------------------------
def synthetic_encoder_cls(token_ids, pad_id, emb_table, w_enc):
    # TODO(synk): the pretrained BertModel/RobertaModel has no Pallas equivalent
    # here; replaced with a deterministic embedding + masked-mean + tanh
    # projection producing the CLS-like vector out[:, 0, :].
    mask = (token_ids != pad_id).astype(jnp.float32)[..., None]   # input_mask
    emb = emb_table[token_ids]                                    # (N, L, H)
    pooled = (emb * mask).sum(1) / jnp.maximum(mask.sum(1), 1.0)
    return jnp.tanh(pooled @ w_enc)                               # (N, H)


# ------------------------------ reference ------------------------------------
def _expmap0_ref(u):
    norm = jnp.maximum(jnp.sqrt(jnp.sum(u * u, -1, keepdims=True)), MIN_NORM)
    gamma = jnp.tanh(norm) * u / norm
    gnorm = jnp.maximum(jnp.sqrt(jnp.sum(gamma * gamma, -1, keepdims=True)), MIN_NORM)
    maxnorm = 1.0 - BALL_EPS
    return jnp.where(gnorm > maxnorm, gamma / gnorm * maxnorm, gamma)


def _dist2_ref(x, y):
    nx = -x
    x2 = jnp.sum(nx * nx, -1, keepdims=True)
    y2 = jnp.sum(y * y, -1, keepdims=True)
    xy = jnp.sum(nx * y, -1, keepdims=True)
    num = (1.0 + 2.0 * xy + y2) * nx + (1.0 - x2) * y
    den = jnp.maximum(1.0 + 2.0 * xy + x2 * y2, MIN_NORM)
    m = num / den
    mnorm = jnp.sqrt(jnp.maximum(jnp.sum(m * m, -1), MIN_NORM * MIN_NORM))
    z = jnp.clip(mnorm, 0.0, 1.0 - 1e-7)
    artanh = 0.5 * (jnp.log1p(z) - jnp.log1p(-z))
    d = 2.0 * artanh
    return d * d


def _reference(cls_doc, cls_sum, cls_cand, w_d, w_s, w_c, batch, cand_num):
    doc = _expmap0_ref(cls_doc @ w_d)
    summ = _expmap0_ref(cls_sum @ w_s)
    cand = _expmap0_ref(cls_cand @ w_c).reshape(batch, cand_num, RANK)
    score = -_dist2_ref(cand, jnp.broadcast_to(doc[:, None, :], cand.shape))
    summary_score = -_dist2_ref(summ, doc)
    return score, summary_score


if __name__ == "__main__":
    B, C, L, VOCAB = 2, 4, 8, 50

    key = jax.random.PRNGKey(0)
    k = jax.random.split(key, 8)
    text_id = jax.random.randint(k[0], (B, L), 2, VOCAB, dtype=jnp.int32)
    candidate_id = jax.random.randint(k[1], (B, C, L), 2, VOCAB, dtype=jnp.int32)
    summary_id = jax.random.randint(k[2], (B, L), 2, VOCAB, dtype=jnp.int32)

    # deterministic parameters (nn.Linear(hidden, rank, bias=False) x3, stored
    # transposed as (H, RANK) so the feature axis stays on the 128-lane axis)
    w_d = jax.random.normal(k[3], (HIDDEN, RANK), jnp.float32) * 0.05
    w_s = jax.random.normal(k[4], (HIDDEN, RANK), jnp.float32) * 0.05
    w_c = jax.random.normal(k[5], (HIDDEN, RANK), jnp.float32) * 0.05
    emb_table = jax.random.normal(k[6], (VOCAB, HIDDEN), jnp.float32) * 0.1
    w_enc = jax.random.normal(k[7], (HIDDEN, HIDDEN), jnp.float32) * 0.1

    # pad_id selection exactly as in the PyTorch forward
    pad_id = 1 if int(text_id[0, 0]) == 0 else 0

    # encoder CLS outputs (glue)
    cls_doc = synthetic_encoder_cls(text_id, pad_id, emb_table, w_enc)
    cls_sum = synthetic_encoder_cls(summary_id, pad_id, emb_table, w_enc)
    cls_cand = synthetic_encoder_cls(candidate_id.reshape(-1, L),   # view(-1, L)
                                     pad_id, emb_table, w_enc)

    out = matchsum_scores(cls_doc, cls_sum, cls_cand, w_d, w_s, w_c)
    jax.block_until_ready(out)

    ref_score, ref_sscore = _reference(cls_doc, cls_sum, cls_cand,
                                       w_d, w_s, w_c, B, C)
    assert out["score"].shape == (B, C)
    assert out["summary_score"].shape == (B,)
    assert jnp.allclose(out["score"], ref_score, atol=5e-3, rtol=5e-3)
    assert jnp.allclose(out["summary_score"], ref_sscore, atol=5e-3, rtol=5e-3)

    print("KERNEL_OK")
</pallas_src>

<mosaic_0001>
module attributes {stable_mosaic.version = 11 : i64} {
  func.func @matchsum_kernel(%arg0: memref<8x32xbf16, #tpu.memory_space<vmem>>, %arg1: memref<8x32xbf16, #tpu.memory_space<vmem>>, %arg2: memref<8x32xbf16, #tpu.memory_space<vmem>>, %arg3: memref<32x128xbf16, #tpu.memory_space<vmem>>, %arg4: memref<32x128xbf16, #tpu.memory_space<vmem>>, %arg5: memref<32x128xbf16, #tpu.memory_space<vmem>>, %arg6: memref<16x1xi32, #tpu.memory_space<vmem>>, %arg7: memref<16x128xf32, #tpu.memory_space<vmem>>) attributes {dimension_semantics = [], scalar_prefetch = 0 : i64, scratch_operands = 0 : i64, tpu.core_type = #tpu.core_type<tc>} {
    %c0 = arith.constant 0 : index
    %c0_0 = arith.constant 0 : index
    %0 = vector.load %arg0[%c0, %c0_0] : memref<8x32xbf16, #tpu.memory_space<vmem>>, vector<8x32xbf16>
    %c0_1 = arith.constant 0 : index
    %c0_2 = arith.constant 0 : index
    %1 = vector.load %arg3[%c0_1, %c0_2] : memref<32x128xbf16, #tpu.memory_space<vmem>>, vector<32x128xbf16>
    %cst = arith.constant dense<0.000000e+00> : vector<8x128xf32>
    %2 = tpu.matmul %0, %1, %cst {dimension_numbers = #tpu.dot_dimension_numbers<[1], [0], [0], [1], [0, 0, 1, 1], [], []>} : vector<8x32xbf16>, vector<32x128xbf16>, vector<8x128xf32> -> vector<8x128xf32>
    %c0_3 = arith.constant 0 : index
    %c0_4 = arith.constant 0 : index
    %3 = vector.load %arg1[%c0_3, %c0_4] : memref<8x32xbf16, #tpu.memory_space<vmem>>, vector<8x32xbf16>
    %c0_5 = arith.constant 0 : index
    %c0_6 = arith.constant 0 : index
    %4 = vector.load %arg4[%c0_5, %c0_6] : memref<32x128xbf16, #tpu.memory_space<vmem>>, vector<32x128xbf16>
    %cst_7 = arith.constant dense<0.000000e+00> : vector<8x128xf32>
    %5 = tpu.matmul %3, %4, %cst_7 {dimension_numbers = #tpu.dot_dimension_numbers<[1], [0], [0], [1], [0, 0, 1, 1], [], []>} : vector<8x32xbf16>, vector<32x128xbf16>, vector<8x128xf32> -> vector<8x128xf32>
    %c0_8 = arith.constant 0 : index
    %c0_9 = arith.constant 0 : index
    %6 = vector.load %arg2[%c0_8, %c0_9] : memref<8x32xbf16, #tpu.memory_space<vmem>>, vector<8x32xbf16>
    %c0_10 = arith.constant 0 : index
    %c0_11 = arith.constant 0 : index
    %7 = vector.load %arg5[%c0_10, %c0_11] : memref<32x128xbf16, #tpu.memory_space<vmem>>, vector<32x128xbf16>
    %cst_12 = arith.constant dense<0.000000e+00> : vector<8x128xf32>
    %8 = tpu.matmul %6, %7, %cst_12 {dimension_numbers = #tpu.dot_dimension_numbers<[1], [0], [0], [1], [0, 0, 1, 1], [], []>} : vector<8x32xbf16>, vector<32x128xbf16>, vector<8x128xf32> -> vector<8x128xf32>
    %9 = arith.mulf %2, %2 : vector<8x128xf32>
    %cst_13 = arith.constant dense<0.000000e+00> : vector<8xf32>
    %10 = vector.multi_reduction <add>, %9, %cst_13 [1] : vector<8x128xf32> to vector<8xf32>
    %11 = vector.shape_cast %10 : vector<8xf32> to vector<8x1xf32>
    %12 = math.sqrt %11 : vector<8x1xf32>
    %cst_14 = arith.constant 1.000000e-15 : f32
    %13 = vector.broadcast %cst_14 : f32 to vector<8x1xf32>
    %14 = arith.maximumf %12, %13 : vector<8x1xf32>
    %15 = math.tanh %14 : vector<8x1xf32>
    %16 = arith.divf %15, %14 : vector<8x1xf32>
    %17 = vector.broadcast %16 : vector<8x1xf32> to vector<8x128xf32>
    %18 = arith.mulf %2, %17 : vector<8x128xf32>
    %cst_15 = arith.constant 0.995999991 : f32
    %19 = vector.broadcast %cst_15 : f32 to vector<8x1xf32>
    %20 = arith.cmpf ogt, %15, %19 : vector<8x1xf32>
    %cst_16 = arith.constant 1.000000e-15 : f32
    %21 = vector.broadcast %cst_16 : f32 to vector<8x1xf32>
    %22 = arith.maximumf %15, %21 : vector<8x1xf32>
    %cst_17 = arith.constant 0.995999991 : f32
    %23 = vector.broadcast %cst_17 : f32 to vector<8x1xf32>
    %24 = arith.divf %23, %22 : vector<8x1xf32>
    %25 = vector.broadcast %24 : vector<8x1xf32> to vector<8x128xf32>
    %26 = arith.mulf %18, %25 : vector<8x128xf32>
    %27 = vector.shape_cast %20 : vector<8x1xi1> to vector<8x1xi1>
    %28 = vector.broadcast %27 : vector<8x1xi1> to vector<8x128xi1>
    %29 = arith.select %28, %26, %18 : vector<8x128xi1>, vector<8x128xf32>
    %cst_18 = arith.constant 0.995999991 : f32
    %30 = vector.broadcast %cst_18 : f32 to vector<8x1xf32>
    %31 = arith.minimumf %15, %30 : vector<8x1xf32>
    %32 = arith.mulf %31, %31 : vector<8x1xf32>
    %33 = tpu.concatenate %5, %8 in 0 : vector<8x128xf32>, vector<8x128xf32> -> vector<16x128xf32>
    %34 = arith.mulf %33, %33 : vector<16x128xf32>
    %cst_19 = arith.constant dense<0.000000e+00> : vector<16xf32>
    %35 = vector.multi_reduction <add>, %34, %cst_19 [1] : vector<16x128xf32> to vector<16xf32>
    %36 = vector.shape_cast %35 : vector<16xf32> to vector<16x1xf32>
    %37 = math.sqrt %36 : vector<16x1xf32>
    %cst_20 = arith.constant 1.000000e-15 : f32
    %38 = vector.broadcast %cst_20 : f32 to vector<16x1xf32>
    %39 = arith.maximumf %37, %38 : vector<16x1xf32>
    %40 = math.tanh %39 : vector<16x1xf32>
    %41 = arith.divf %40, %39 : vector<16x1xf32>
    %42 = vector.broadcast %41 : vector<16x1xf32> to vector<16x128xf32>
    %43 = arith.mulf %33, %42 : vector<16x128xf32>
    %cst_21 = arith.constant 0.995999991 : f32
    %44 = vector.broadcast %cst_21 : f32 to vector<16x1xf32>
    %45 = arith.cmpf ogt, %40, %44 : vector<16x1xf32>
    %cst_22 = arith.constant 1.000000e-15 : f32
    %46 = vector.broadcast %cst_22 : f32 to vector<16x1xf32>
    %47 = arith.maximumf %40, %46 : vector<16x1xf32>
    %cst_23 = arith.constant 0.995999991 : f32
    %48 = vector.broadcast %cst_23 : f32 to vector<16x1xf32>
    %49 = arith.divf %48, %47 : vector<16x1xf32>
    %50 = vector.broadcast %49 : vector<16x1xf32> to vector<16x128xf32>
    %51 = arith.mulf %43, %50 : vector<16x128xf32>
    %52 = vector.shape_cast %45 : vector<16x1xi1> to vector<16x1xi1>
    %53 = vector.broadcast %52 : vector<16x1xi1> to vector<16x128xi1>
    %54 = arith.select %53, %51, %43 : vector<16x128xi1>, vector<16x128xf32>
    %cst_24 = arith.constant 0.995999991 : f32
    %55 = vector.broadcast %cst_24 : f32 to vector<16x1xf32>
    %56 = arith.minimumf %40, %55 : vector<16x1xf32>
    %57 = arith.mulf %56, %56 : vector<16x1xf32>
    %58 = tpu.iota {dimensions = array<i32: 1>} : vector<16x8xi32>
    %c0_25 = arith.constant 0 : index
    %c0_26 = arith.constant 0 : index
    %59 = vector.load %arg6[%c0_25, %c0_26] : memref<16x1xi32, #tpu.memory_space<vmem>>, vector<16x1xi32>
    %60 = vector.broadcast %59 : vector<16x1xi32> to vector<16x8xi32>
    %61 = arith.cmpi eq, %58, %60 : vector<16x8xi32>
    %cst_27 = arith.constant 1.000000e+00 : f32
    %cst_28 = arith.constant 0.000000e+00 : f32
    %62 = vector.broadcast %cst_27 : f32 to vector<16x8xf32>
    %63 = vector.broadcast %cst_28 : f32 to vector<16x8xf32>
    %64 = arith.select %61, %62, %63 : vector<16x8xi1>, vector<16x8xf32>
    %65 = arith.truncf %64 : vector<16x8xf32> to vector<16x8xbf16>
    %66 = arith.truncf %29 : vector<8x128xf32> to vector<8x128xbf16>
    %cst_29 = arith.constant dense<0.000000e+00> : vector<16x128xf32>
    %67 = tpu.matmul %65, %66, %cst_29 {dimension_numbers = #tpu.dot_dimension_numbers<[1], [0], [0], [1], [0, 0, 1, 1], [], []>} : vector<16x8xbf16>, vector<8x128xbf16>, vector<16x128xf32> -> vector<16x128xf32>
    %68 = arith.truncf %32 : vector<8x1xf32> to vector<8x1xbf16>
    %cst_30 = arith.constant dense<0.000000e+00> : vector<16x1xf32>
    %69 = tpu.matmul %65, %68, %cst_30 {dimension_numbers = #tpu.dot_dimension_numbers<[1], [0], [0], [1], [0, 0, 1, 1], [], []>} : vector<16x8xbf16>, vector<8x1xbf16>, vector<16x1xf32> -> vector<16x1xf32>
    %70 = arith.mulf %67, %54 : vector<16x128xf32>
    %cst_31 = arith.constant dense<0.000000e+00> : vector<16xf32>
    %71 = vector.multi_reduction <add>, %70, %cst_31 [1] : vector<16x128xf32> to vector<16xf32>
    %72 = vector.shape_cast %71 : vector<16xf32> to vector<16x1xf32>
    %cst_32 = arith.constant 0.000000e+00 : f32
    %73 = vector.broadcast %cst_32 : f32 to vector<16x1xf32>
    %74 = arith.subf %73, %72 : vector<16x1xf32>
    %cst_33 = arith.constant 2.000000e+00 : f32
    %75 = vector.broadcast %cst_33 : f32 to vector<16x1xf32>
    %76 = arith.mulf %75, %74 : vector<16x1xf32>
    %cst_34 = arith.constant 1.000000e+00 : f32
    %77 = vector.broadcast %cst_34 : f32 to vector<16x1xf32>
    %78 = arith.addf %77, %76 : vector<16x1xf32>
    %79 = arith.addf %78, %57 : vector<16x1xf32>
    %cst_35 = arith.constant 1.000000e+00 : f32
    %80 = vector.broadcast %cst_35 : f32 to vector<16x1xf32>
    %81 = arith.subf %80, %69 : vector<16x1xf32>
    %82 = arith.mulf %79, %79 : vector<16x1xf32>
    %83 = arith.mulf %82, %69 : vector<16x1xf32>
    %cst_36 = arith.constant 2.000000e+00 : f32
    %84 = vector.broadcast %cst_36 : f32 to vector<16x1xf32>
    %85 = arith.mulf %84, %79 : vector<16x1xf32>
    %86 = arith.mulf %85, %81 : vector<16x1xf32>
    %87 = arith.mulf %86, %74 : vector<16x1xf32>
    %88 = arith.addf %83, %87 : vector<16x1xf32>
    %89 = arith.mulf %81, %81 : vector<16x1xf32>
    %90 = arith.mulf %89, %57 : vector<16x1xf32>
    %91 = arith.addf %88, %90 : vector<16x1xf32>
    %cst_37 = arith.constant 2.000000e+00 : f32
    %92 = vector.broadcast %cst_37 : f32 to vector<16x1xf32>
    %93 = arith.mulf %92, %74 : vector<16x1xf32>
    %cst_38 = arith.constant 1.000000e+00 : f32
    %94 = vector.broadcast %cst_38 : f32 to vector<16x1xf32>
    %95 = arith.addf %94, %93 : vector<16x1xf32>
    %96 = arith.mulf %69, %57 : vector<16x1xf32>
    %97 = arith.addf %95, %96 : vector<16x1xf32>
    %cst_39 = arith.constant 1.000000e-15 : f32
    %98 = vector.broadcast %cst_39 : f32 to vector<16x1xf32>
    %99 = arith.maximumf %97, %98 : vector<16x1xf32>
    %100 = arith.mulf %99, %99 : vector<16x1xf32>
    %101 = arith.divf %91, %100 : vector<16x1xf32>
    %cst_40 = arith.constant 1.000000e-30 : f32
    %102 = vector.broadcast %cst_40 : f32 to vector<16x1xf32>
    %103 = arith.maximumf %101, %102 : vector<16x1xf32>
    %104 = math.sqrt %103 : vector<16x1xf32>
    %cst_41 = arith.constant 0.000000e+00 : f32
    %cst_42 = arith.constant 0.99999988 : f32
    %105 = vector.broadcast %cst_41 : f32 to vector<16x1xf32>
    %106 = arith.maximumf %105, %104 : vector<16x1xf32>
    %107 = vector.broadcast %cst_42 : f32 to vector<16x1xf32>
    %108 = arith.minimumf %107, %106 : vector<16x1xf32>
    %cst_43 = arith.constant 1.000000e+00 : f32
    %109 = vector.broadcast %cst_43 : f32 to vector<16x1xf32>
    %110 = arith.addf %109, %108 : vector<16x1xf32>
    %cst_44 = arith.constant 1.000000e+00 : f32
    %111 = vector.broadcast %cst_44 : f32 to vector<16x1xf32>
    %112 = arith.subf %111, %108 : vector<16x1xf32>
    %113 = arith.divf %110, %112 : vector<16x1xf32>
    %114 = math.log %113 : vector<16x1xf32>
    %cst_45 = arith.constant 5.000000e-01 : f32
    %115 = vector.broadcast %cst_45 : f32 to vector<16x1xf32>
    %116 = arith.mulf %115, %114 : vector<16x1xf32>
    %cst_46 = arith.constant -4.000000e+00 : f32
    %117 = vector.broadcast %cst_46 : f32 to vector<16x1xf32>
    %118 = arith.mulf %117, %116 : vector<16x1xf32>
    %119 = arith.mulf %118, %116 : vector<16x1xf32>
    %120 = vector.shape_cast %119 : vector<16x1xf32> to vector<16x1xf32>
    %121 = vector.broadcast %120 : vector<16x1xf32> to vector<16x128xf32>
    %c0_47 = arith.constant 0 : index
    %c0_48 = arith.constant 0 : index
    %122 = vector.load %arg7[%c0_47, %c0_48] : memref<16x128xf32, #tpu.memory_space<vmem>>, vector<16x128xf32>
    tpu.vector_store %arg7[%c0_47, %c0_48], %121 {strides = array<i32>} : memref<16x128xf32, #tpu.memory_space<vmem>>, vector<16x128xf32>,
    return
  }
}

</mosaic_0001>

<bundles_post_ra>
// kernel: tpu_custom_call.1
= control target key start
LH: loop header
LB: loop body
LE: loop exit
PB: predicated region body
PF: predicated region fallthrough
CT: control target
= control target key end

     0   :  { %12 = vsyncpa [#allocation3], 0  ;;  %s974_s0 = inlined_call_operand.hbm [shape: bf16[8,32], index: 0, kind: input, shape index: {}]   ;;  %s975_s1 = inlined_call_operand.hbm [shape: bf16[8,32], index: 1, kind: input, shape index: {}]   ;;  %s976_s2 = inlined_call_operand.hbm [shape: bf16[8,32], index: 2, kind: input, shape index: {}]   ;;  %s977_s3 = inlined_call_operand.vmem [shape: bf16[32,128], index: 3, kind: input, shape index: {}]   ;;  %s978_s4 = inlined_call_operand.hbm [shape: bf16[32,128], index: 4, kind: input, shape index: {}]   ;;  %s979_s5 = inlined_call_operand.hbm [shape: bf16[32,128], index: 5, kind: input, shape index: {}]   ;;  %s980_s6 = inlined_call_operand.vmem [shape: s32[16,1], index: 6, kind: input, shape index: {}]   ;;  %s981_s7 = inlined_call_operand.hbm [shape: f32[16,128], index: 7, kind: output, shape index: {}]  }
   0x1   :  { %13 = vsyncpa [#allocation6], 0 }
   0x2   :  { %14 = vsyncpa [#allocation9], 0  ;;  %s32_s26 = sshll.u32 %s975_s1, 4  ;;  %s33_s26 = int_to_ptr.hbm [resolvable:$true] %s32_s26 }
   0x3   :  { %15 = vsyncpa [#allocation4], 0  ;;  %s845_s27 = smov [#allocation5]   ;;  %s55_s8 = sshll.u32 %s978_s4, 4  ;;  %s56_s8 = int_to_ptr.hbm [resolvable:$true] %s55_s8 }
   0x4   :  { %s34_s28 = sshll.u32 %s845_s27, 4  ;;  %s846_s9 = smov [#allocation8]   ;;  %s35_s28 = int_to_ptr.vmem [resolvable:$true] %s34_s28 }
   0x5   :  { %37 = dma.hbm_to_vmem [thread:$0]  %s33_s26, 64, %s35_s28, [#allocation6]  }
   0x6   :  { %s57_s10 = sshll.u32 %s846_s9, 4  ;;  %s847_s11 = smov 64   ;;  %s58_s10 = int_to_ptr.vmem [resolvable:$true] %s57_s10 }
   0x7   :  { %s848_s12 = smov 4   ;;  %s21_s1 = sshll.u32 %s974_s0, 4  ;;  %s22_s1 = int_to_ptr.hbm [resolvable:$true] %s21_s1 }
   0x8   :  { %63 = dma.hbm_to_vmem [thread:$0]  %s56_s8, 256, %s58_s10, [#allocation9], %s847_s11, %s847_s11, %s848_s12  }
   0x9   :  { %s849_s15 = smov [#allocation2]   ;;  %s43_s4 = sshll.u32 %s976_s2, 4  ;;  %s44_s4 = int_to_ptr.hbm [resolvable:$true] %s43_s4 }
   0xa   :  { %s23_s16 = sshll.u32 %s849_s15, 4  ;;  %s850_s19 = smov [#allocation7]   ;;  %s24_s16 = int_to_ptr.vmem [resolvable:$true] %s23_s16 }
   0xb   :  { %26 = dma.hbm_to_vmem [thread:$0]  %s22_s1, 64, %s24_s16, [#allocation3]  }
   0xc   :  { %s45_s20 = sshll.u32 %s850_s19, 4  ;;  %s68_s23 = sshll.u32 %s979_s5, 4  ;;  %s46_s20 = int_to_ptr.vmem [resolvable:$true] %s45_s20  ;;  %s69_s23 = int_to_ptr.hbm [resolvable:$true] %s68_s23 }
   0xd   :  { %48 = dma.hbm_to_vmem [thread:$0]  %s44_s4, 64, %s46_s20, [#allocation6]  }
   0xe   :  { %s851_s0 = smov [#allocation10]  }
   0xf   :  { %s70_s24 = sshll.u32 %s851_s0, 4  ;;  %s71_s24 = int_to_ptr.vmem [resolvable:$true] %s70_s24 }
  0x10   :  { %76 = dma.hbm_to_vmem [thread:$0]  %s69_s23, 256, %s71_s24, [#allocation9], %s847_s11, %s847_s11, %s848_s12  }
  0x11   :  { %837 = dma.done.wait [#allocation3], 64  }
  0x12   :  { %838 = vsyncadd [#allocation3], 4294967232 }
  0x13   :  { %839 = dma.done.wait [#allocation6], 128  }
  0x14   :  { %840 = vsyncadd [#allocation6], 4294967168 }
  0x15   :  { %841 = dma.done.wait [#allocation9], 512  }
  0x16   :  { %842 = vsyncadd [#allocation9], 4294966784  ;;  %v852_v0 = vmov 0   ;;  %v633_v1 = vld [vmem:[%s977_s3 + $0x8] sm:$0xff]  ;;  %v635_v2 = vld [vmem:[#allocation8 + $0x8] sm:$0xff]  ;;  %vm117_vm0 = vcmask 261120   ;;  %v368_v47 = vlaneseq }
  0x17   :  { %651 = vset.pattern.permute.xlu1 %v852_v0  ;;  %650 = vset.pattern.permute.xlu0 %v852_v0  ;;  %v637_v3 = vld [vmem:[#allocation10 + $0x8] sm:$0xff]  ;;  %v634_v5 = vld [vmem:[#allocation8] sm:$0xff]  ;;  %v636_v6 = vld [vmem:[#allocation10] sm:$0xff]  ;;  %vm388_vm14 = vcmask 1043456   ;;  %vm384_vm15 = vcmask 64512   ;;  %s588_s10 = sshll.u32 %s981_s7, 4  ;;  %s589_s10 = int_to_ptr.hbm [resolvable:$true] %s588_s10 }
  0x18   :  { %652 = vset.pattern.permute.xlu2 %v852_v0  ;;  %127 = vmatpush.bf16.msra.mxu0 %v633_v1  ;;  %v632_v4 = vld [vmem:[%s977_s3] sm:$0xff]  ;;  %v371_v7 = vld [vmem:[%s980_s6 + $0x8] sm:$0xff]  ;;  %v369_v55 = vand.u32 127, %v368_v47  ;;  %v853_v1 = vmov 0.0   ;;  %s855_s11 = smov 128   ;;  %s856_s12 = smov 8  }
  0x19   :  { %160 = vmatpush.bf16.msra.mxu1 %v635_v2  ;;  %193 = vmatpush.bf16.msra.mxu2 %v637_v3  ;;  %v100_v8 = vld [vmem:[#allocation2] sm:$0xf]  ;;  %v134_v9 = vld [vmem:[#allocation5] sm:$0xf]  ;;  %v167_v10 = vld [vmem:[#allocation7] sm:$0xf] }
  0x1a   :  { %376 = vperm.xlu1 %651, %v371_v7   ;;  %v370_v20 = vld [vmem:[%s980_s6] sm:$0xff]  ;;  %s854_s6 = smov [#allocation11]  }
  0x1b   :  { %s586_s30 = sshll.u32 %s854_s6, 4  ;;  %s587_s30 = int_to_ptr.vmem [resolvable:$true] %s586_s30 }
  0x1c   :  { %128 = vmatpush.bf16.msra.mxu0 %v632_v4 }
  0x1d   :  { %161 = vmatpush.bf16.msra.mxu1 %v634_v5  ;;  %194 = vmatpush.bf16.msra.mxu2 %v636_v6 }
  0x1f   :  { %611 = vmatmul.msk.bf16.vlgmr.msra.gmra.mxu0 %vm117_vm0, %v100_v8 }
  0x20   :  { %620 = vmatmul.msk.bf16.vlgmr.msra.gmra.mxu1 %vm117_vm0, %v134_v9  ;;  %629 = vmatmul.msk.bf16.vlgmr.msra.gmra.mxu2 %vm117_vm0, %v167_v10 }
  0x8c   :  { %v377_v60 = vpop.permute.xlu1 %376 }
  0x8d   :  { %vm379_vm11 = vcmp.eq.s32.totalorder %v369_v55, %v377_v60 }
  0x8e   :  { %v381_v2 = vsel %vm379_vm11, 1.0, %v853_v1 }
  0x9c   :  { %v921_v11 = vpop.f32.mrf.mxu0 }
  0x9d   :  { %v923_v12 = vpop.f32.mrf.mxu1  ;;  %v200_v14 = vmul.f32 %v921_v11, %v921_v11 }
  0x9e   :  { %v256_v13 = vmul.f32 %v923_v12, %v923_v12 }
  0x9f   :  { %201 = vadd.xlane.f32.xlu0 %v200_v14 }
  0xa0   :  { %258 = vadd.xlane.f32.xlu1 %v256_v13 }
  0xa3   :  { %v929_v15 = vpop.f32.mrf.mxu2 }
  0xa4   :  { %v132_v16 = vpop.f32.mrf.mxu0  ;;  %v257_v17 = vmul.f32 %v929_v15, %v929_v15 }
  0xa5   :  { %v165_v18 = vpop.f32.mrf.mxu1 }
  0xa6   :  { %260 = vadd.xlane.f32.xlu2 %v257_v17 }
  0xab   :  { %v198_v19 = vpop.f32.mrf.mxu2 }
  0xb3   :  { %373 = vperm.xlu0 %650, %v370_v20  }
 0x112   :  { %v202_v21 = vpop.xlane.xlu0 %201 }
 0x113   :  { %653 = vrsqrt.f32 %v202_v21  ;;  %vm210_vm1 = vcmp.eq.f32.partialorder %v202_v21, inf  ;;  %v213_v29 = vand.u32 2147483648, %v202_v21  ;;  %vm212_vm2 = vcmp.eq.f32.partialorder %v202_v21, 0.0  ;;  %v259_v10 = vpop.xlane.xlu1 %258 }
 0x114   :  { %vm269_vm0 = vcmp.eq.f32.partialorder %v259_v10, inf }
 0x119   :  { %v654_v22 = vpop.eup %653 }
 0x11a   :  { %v204_v23 = vmul.f32 %v654_v22, %v202_v21 }
 0x11c   :  { %v205_v24 = vmul.f32 %v654_v22, %v204_v23 }
 0x11e   :  { %v206_v25 = vmul.f32 0.5, %v205_v24 }
 0x120   :  { %v207_v26 = vsub.f32 1.5, %v206_v25 }
 0x122   :  { %v208_v27 = vmul.f32 %v654_v22, %v207_v26  ;;  %v272_v26 = vand.u32 2147483648, %v259_v10 }
 0x124   :  { %v209_v28 = vmul.f32 %v208_v27, %v202_v21 }
 0x125   :  { %v374_v57 = vpop.permute.xlu0 %373 }
 0x126   :  { %v211_v30 = vsel %vm210_vm1, %v202_v21, %v209_v28  ;;  %vm378_vm12 = vcmp.eq.s32.totalorder %v369_v55, %v374_v57  ;;  %vm271_vm1 = vcmp.eq.f32.partialorder %v259_v10, 0.0 }
 0x127   :  { %v214_v31 = vsel %vm212_vm2, %v213_v29, %v211_v30  ;;  %v380_v3 = vsel %vm378_vm12, 1.0, %v853_v1 }
 0x128   :  { %v215_v32 = vmax.f32 %v214_v31, 1e-15  ;;  %v382_v7 = vpack.c.bf16 %v381_v2, %v380_v3 }
 0x12a   :  { %655 = vrcp.f32 %v215_v32  ;;  %v228_v40 = vand.u32 2147483648, %v215_v32  ;;  %vm222_vm4 = vweird.f32 %v215_v32  ;;  %v226_v41 = vand.u32 2147483647, %v215_v32 }
 0x12b   :  { %657 = vtanh.f32 %v215_v32 }
 0x12c   :  { %v229_v45 = vor.u32 1.1754944e-38, %v228_v40  ;;  %vm227_vm6 = vcmp.eq.f32.partialorder %v226_v41, 8.507059e+37 }
 0x130   :  { %v656_v33 = vpop.eup %655 }
 0x131   :  { %v658_v34 = vpop.eup %657  ;;  %v218_v35 = vmul.f32 %v656_v33, %v215_v32  ;;  %vm223_vm3 = vweird.f32 %v656_v33 }
 0x132   :  { %v234_v36 = vmax.f32 %v658_v34, 1e-15  ;;  %vm224_vm5 = vmor %vm222_vm4, %vm223_vm3  ;;  %v254_v54 = vmin.f32 %v658_v34, 0.996  ;;  %vm233_vm13 = vcmp.gt.f32.partialorder %v658_v34, 0.996 }
 0x133   :  { %v219_v37 = vsub.f32 1.0, %v218_v35 }
 0x134   :  { %659 = vrcp.f32 %v234_v36  ;;  %v246_v49 = vand.u32 2147483648, %v234_v36  ;;  %v244_v51 = vand.u32 2147483647, %v234_v36  ;;  %vm240_vm8 = vweird.f32 %v234_v36 }
 0x135   :  { %v220_v38 = vmul.f32 %v656_v33, %v219_v37  ;;  %v255_v63 = vmul.f32 %v254_v54, %v254_v54  ;;  %661 = vrsqrt.f32 %v259_v10 }
 0x136   :  { %v247_v56 = vor.u32 1.1754944e-38, %v246_v49  ;;  %vm245_vm10 = vcmp.eq.f32.partialorder %v244_v51, 8.507059e+37 }
 0x137   :  { %v221_v39 = vadd.f32 %v656_v33, %v220_v38  ;;  %v406_v5 = vpack.c.bf16 %v255_v63, %v255_v63 }
 0x139   :  { %v225_v43 = vsel %vm224_vm5, %v656_v33, %v221_v39  ;;  %v408_v9 = vsel %vm388_vm14, %v406_v5, 0 }
 0x13a   :  { %v660_v42 = vpop.eup %659  ;;  %v230_v48 = vsel %vm227_vm6, %v229_v45, %v225_v43 }
 0x13b   :  { %v236_v44 = vmul.f32 %v660_v42, %v234_v36  ;;  %vm241_vm7 = vweird.f32 %v660_v42  ;;  %v231_v52 = vmul.f32 %v658_v34, %v230_v48  ;;  %v662_v13 = vpop.eup %661 }
 0x13c   :  { %vm242_vm9 = vmor %vm240_vm8, %vm241_vm7  ;;  %v263_v14 = vmul.f32 %v662_v13, %v259_v10 }
 0x13d   :  { %v237_v46 = vsub.f32 1.0, %v236_v44  ;;  %v232_v61 = vmul.f32 %v231_v52, %v921_v11  ;;  %v261_v11 = vpop.xlane.xlu2 %260 }
 0x13e   :  { %663 = vrsqrt.f32 %v261_v11  ;;  %v264_v16 = vmul.f32 %v662_v13, %v263_v14  ;;  %vm281_vm2 = vcmp.eq.f32.partialorder %v261_v11, inf  ;;  %v284_v32 = vand.u32 2147483648, %v261_v11 }
 0x13f   :  { %v238_v50 = vmul.f32 %v660_v42, %v237_v46  ;;  %vm283_vm3 = vcmp.eq.f32.partialorder %v261_v11, 0.0 }
 0x140   :  { %v265_v18 = vmul.f32 0.5, %v264_v16 }
 0x141   :  { %v239_v53 = vadd.f32 %v660_v42, %v238_v50 }
 0x142   :  { %v266_v20 = vsub.f32 1.5, %v265_v18 }
 0x143   :  { %v243_v58 = vsel %vm242_vm9, %v660_v42, %v239_v53 }
 0x144   :  { %v248_v59 = vsel %vm245_vm10, %v247_v56, %v243_v58  ;;  %v664_v17 = vpop.eup %663  ;;  %v267_v22 = vmul.f32 %v662_v13, %v266_v20 }
 0x145   :  { %v249_v62 = vmul.f32 0.996, %v248_v59  ;;  %v275_v19 = vmul.f32 %v664_v17, %v261_v11 }
 0x146   :  { %v268_v24 = vmul.f32 %v267_v22, %v259_v10 }
 0x147   :  { %v250_v0 = vmul.f32 %v249_v62, %v232_v61  ;;  %v276_v21 = vmul.f32 %v664_v17, %v275_v19 }
 0x148   :  { %v270_v27 = vsel %vm269_vm0, %v259_v10, %v268_v24 }
 0x149   :  { %v253_v4 = vsel %vm233_vm13, %v250_v0, %v232_v61  ;;  %v277_v23 = vmul.f32 0.5, %v276_v21  ;;  %v273_v29 = vsel %vm271_vm1, %v272_v26, %v270_v27 }
 0x14a   :  { %v383_v6 = vpack.c.bf16 %v253_v4, %v253_v4  ;;  %v286_v31 = vmax.f32 %v273_v29, 1e-15 }
 0x14b   :  { %v278_v25 = vsub.f32 1.5, %v277_v23 }
 0x14c   :  { %v390_v8 = vsel %vm388_vm14, %v383_v6, 0  ;;  %665 = vtanh.f32 %v286_v31  ;;  %vm295_vm4 = vweird.f32 %v286_v31  ;;  %v299_v52 = vand.u32 2147483647, %v286_v31 }
 0x14d   :  { %399 = vmatpush.bf16.msra.mxu3 %v390_v8  ;;  %v279_v28 = vmul.f32 %v664_v17, %v278_v25  ;;  %v301_v53 = vand.u32 2147483648, %v286_v31 }
 0x14e   :  { %vm300_vm10 = vcmp.eq.f32.partialorder %v299_v52, 8.507059e+37 }
 0x14f   :  { %v280_v30 = vmul.f32 %v279_v28, %v261_v11  ;;  %v302_v61 = vor.u32 1.1754944e-38, %v301_v53 }
 0x150   :  { %630 = vmatmul.msk.bf16.vlgmr.msra.gmra.mxu3 %vm384_vm15, %v382_v7 }
 0x151   :  { %417 = vmatpush.bf16.msrb.mxu3 %v408_v9  ;;  %v282_v33 = vsel %vm281_vm2, %v261_v11, %v280_v30 }
 0x152   :  { %v285_v34 = vsel %vm283_vm3, %v284_v32, %v282_v33  ;;  %v939_v36 = vpop.eup %665 }
 0x153   :  { %v937_v35 = vmax.f32 %v285_v34, 1e-15  ;;  %v324_v37 = vmax.f32 %v939_v36, 1e-15  ;;  %v364_v33 = vmin.f32 %v939_v36, 0.996 }
 0x155   :  { %667 = vtanh.f32 %v937_v35  ;;  %vm331_vm6 = vweird.f32 %v324_v37  ;;  %v337_v57 = vand.u32 2147483648, %v324_v37  ;;  %v335_v59 = vand.u32 2147483647, %v324_v37 }
 0x156   :  { %669 = vrcp.f32 %v286_v31  ;;  %vm310_vm11 = vweird.f32 %v937_v35  ;;  %v316_v5 = vand.u32 2147483648, %v937_v35 }
 0x157   :  { %671 = vrcp.f32 %v324_v37  ;;  %v338_v1 = vor.u32 1.1754944e-38, %v337_v57  ;;  %vm336_vm12 = vcmp.eq.f32.partialorder %v335_v59, 8.507059e+37 }
 0x158   :  { %673 = vrcp.f32 %v937_v35  ;;  %v317_v14 = vor.u32 1.1754944e-38, %v316_v5 }
 0x15b   :  { %v943_v38 = vpop.eup %667 }
 0x15c   :  { %v670_v39 = vpop.eup %669  ;;  %v325_v40 = vmax.f32 %v943_v38, 1e-15 }
 0x15d   :  { %v672_v41 = vpop.eup %671  ;;  %v291_v42 = vmul.f32 %v670_v39, %v286_v31  ;;  %vm296_vm5 = vweird.f32 %v670_v39 }
 0x15e   :  { %675 = vrcp.f32 %v325_v40  ;;  %v327_v43 = vmul.f32 %v672_v41, %v324_v37  ;;  %v674_v45 = vpop.eup %673  ;;  %vm332_vm7 = vweird.f32 %v672_v41  ;;  %vm948_vm8 = vmor %vm295_vm4, %vm296_vm5  ;;  %vm346_vm14 = vweird.f32 %v325_v40 }
 0x15f   :  { %v292_v44 = vsub.f32 1.0, %v291_v42  ;;  %v306_v49 = vmul.f32 %v674_v45, %v937_v35  ;;  %vm952_vm9 = vmor %vm331_vm6, %vm332_vm7  ;;  %vm311_vm13 = vweird.f32 %v674_v45  ;;  %v352_v9 = vand.u32 2147483648, %v325_v40 }
 0x160   :  { %631 = vmatmul.msk.bf16.vlgmr.msrb.gmra.mxu3 %vm384_vm15, %v382_v7  ;;  %v328_v46 = vsub.f32 1.0, %v327_v43  ;;  %v314_v7 = vand.u32 2147483647, %v937_v35  ;;  %vm312_vm0 = vmor %vm310_vm11, %vm311_vm13  ;;  %v350_v13 = vand.u32 2147483647, %v325_v40 }
 0x161   :  { %v293_v48 = vmul.f32 %v670_v39, %v292_v44  ;;  %v307_v55 = vsub.f32 1.0, %v306_v49  ;;  %v353_v18 = vor.u32 1.1754944e-38, %v352_v9  ;;  %vm322_vm4 = vcmp.gt.f32.partialorder %v939_v36, 0.996 }
 0x162   :  { %v329_v50 = vmul.f32 %v672_v41, %v328_v46  ;;  %vm315_vm2 = vcmp.eq.f32.partialorder %v314_v7, 8.507059e+37  ;;  %vm351_vm3 = vcmp.eq.f32.partialorder %v350_v13, 8.507059e+37  ;;  %vm323_vm5 = vcmp.gt.f32.partialorder %v943_v38, 0.996 }
 0x163   :  { %v294_v54 = vadd.f32 %v670_v39, %v293_v48  ;;  %v308_v0 = vmul.f32 %v674_v45, %v307_v55 }
 0x164   :  { %v676_v47 = vpop.eup %675  ;;  %v330_v58 = vadd.f32 %v672_v41, %v329_v50 }
 0x165   :  { %v342_v51 = vmul.f32 %v676_v47, %v325_v40  ;;  %v298_v63 = vsel %vm948_vm8, %v670_v39, %v294_v54  ;;  %v309_v6 = vadd.f32 %v674_v45, %v308_v0  ;;  %vm347_vm15 = vweird.f32 %v676_v47 }
 0x166   :  { %v334_v2 = vsel %vm952_vm9, %v672_v41, %v330_v58  ;;  %v303_v4 = vsel %vm300_vm10, %v302_v61, %v298_v63  ;;  %vm348_vm1 = vmor %vm346_vm14, %vm347_vm15  ;;  %v366_v39 = vmul.f32 %v364_v33, %v364_v33 }
 0x167   :  { %v343_v60 = vsub.f32 1.0, %v342_v51  ;;  %v339_v8 = vsel %vm336_vm12, %v338_v1, %v334_v2  ;;  %v304_v10 = vmul.f32 %v939_v36, %v303_v4  ;;  %v313_v17 = vsel %vm312_vm0, %v674_v45, %v309_v6 }
 0x168   :  { %v340_v16 = vmul.f32 0.996, %v339_v8  ;;  %v318_v21 = vsel %vm315_vm2, %v317_v14, %v313_v17 }
 0x169   :  { %v344_v3 = vmul.f32 %v676_v47, %v343_v60  ;;  %v320_v19 = vmul.f32 %v304_v10, %v923_v12  ;;  %v319_v24 = vmul.f32 %v943_v38, %v318_v21 }
 0x16b   :  { %v345_v11 = vadd.f32 %v676_v47, %v344_v3  ;;  %v356_v22 = vmul.f32 %v340_v16, %v320_v19  ;;  %v321_v29 = vmul.f32 %v319_v24, %v929_v15  ;;  %v365_v15 = vmin.f32 %v943_v38, 0.996 }
 0x16d   :  { %v349_v20 = vsel %vm348_vm1, %v676_v47, %v345_v11  ;;  %v362_v25 = vsel %vm322_vm4, %v356_v22, %v320_v19  ;;  %v367_v51 = vmul.f32 %v365_v15, %v365_v15 }
 0x16e   :  { %v354_v23 = vsel %vm351_vm3, %v353_v18, %v349_v20 }
 0x16f   :  { %v355_v27 = vmul.f32 0.996, %v354_v23 }
 0x171   :  { %v357_v30 = vmul.f32 %v355_v27, %v321_v29 }
 0x173   :  { %v363_v12 = vsel %vm323_vm5, %v357_v30, %v321_v29 }
 0x1d3   :  { %v401_v26 = vpop.f32.mrf.mxu3 }
 0x1d4   :  { %v424_v28 = vmul.f32 %v401_v26, %v362_v25 }
 0x1d6   :  { %426 = vadd.xlane.f32.xlu2 %v424_v28 }
 0x1db   :  { %v403_v31 = vpop.f32.mrf.mxu3 }
 0x1dc   :  { %v425_v32 = vmul.f32 %v403_v31, %v363_v12 }
 0x1de   :  { %428 = vadd.xlane.f32.xlu2 %v425_v32 }
 0x1e3   :  { %v419_v35 = vpop.f32.mrf.mxu3 }
 0x1e4   :  { %v458_v41 = vmul.f32 %v419_v35, %v366_v39  ;;  %v438_v36 = vsub.f32 1.0, %v419_v35 }
 0x1e6   :  { %v452_v63 = vmul.f32 %v438_v36, %v438_v36 }
 0x1e8   :  { %v454_v8 = vmul.f32 %v452_v63, %v366_v39 }
 0x1eb   :  { %v421_v48 = vpop.f32.mrf.mxu3 }
 0x1ec   :  { %v459_v53 = vmul.f32 %v421_v48, %v367_v51  ;;  %v439_v3 = vsub.f32 1.0, %v421_v48 }
 0x1ee   :  { %v453_v22 = vmul.f32 %v439_v3, %v439_v3 }
 0x1f0   :  { %v455_v30 = vmul.f32 %v453_v22, %v367_v51 }
 0x249   :  { %v427_v34 = vpop.xlane.xlu2 %426 }
 0x24a   :  { %v430_v37 = vsub.f32 0.0, %v427_v34 }
 0x24c   :  { %v432_v40 = vmul.f32 2.0, %v430_v37 }
 0x24e   :  { %v434_v42 = vadd.f32 1.0, %v432_v40 }
 0x250   :  { %v460_v43 = vadd.f32 %v458_v41, %v434_v42  ;;  %v436_v44 = vadd.f32 %v434_v42, %v366_v39 }
 0x251   :  { %v429_v45 = vpop.xlane.xlu2 %428 }
 0x252   :  { %v462_v46 = vmax.f32 %v460_v43, 1e-15  ;;  %v431_v47 = vsub.f32 0.0, %v429_v45  ;;  %v444_v52 = vmul.f32 2.0, %v436_v44  ;;  %v440_v57 = vmul.f32 %v436_v44, %v436_v44 }
 0x254   :  { %v464_v49 = vmul.f32 %v462_v46, %v462_v46  ;;  %v433_v50 = vmul.f32 2.0, %v431_v47  ;;  %v446_v55 = vmul.f32 %v444_v52, %v438_v36  ;;  %v442_v0 = vmul.f32 %v440_v57, %v419_v35 }
 0x256   :  { %677 = vrcp.f32 %v464_v49  ;;  %v435_v54 = vadd.f32 1.0, %v433_v50  ;;  %v448_v38 = vmul.f32 %v446_v55, %v430_v37  ;;  %v477_v4 = vand.u32 2147483648, %v464_v49 }
 0x257   :  { %v475_v7 = vand.u32 2147483647, %v464_v49  ;;  %vm471_vm7 = vweird.f32 %v464_v49 }
 0x258   :  { %v461_v56 = vadd.f32 %v459_v53, %v435_v54  ;;  %v437_v58 = vadd.f32 %v435_v54, %v367_v51  ;;  %v450_v5 = vadd.f32 %v448_v38, %v442_v0  ;;  %v478_v11 = vor.u32 1.1754944e-38, %v477_v4 }
 0x259   :  { %vm476_vm9 = vcmp.eq.f32.partialorder %v475_v7, 8.507059e+37 }
 0x25a   :  { %v463_v59 = vmax.f32 %v461_v56, 1e-15  ;;  %v445_v2 = vmul.f32 2.0, %v437_v58  ;;  %v456_v13 = vadd.f32 %v454_v8, %v450_v5  ;;  %v441_v16 = vmul.f32 %v437_v58, %v437_v58 }
 0x25c   :  { %v678_v60 = vpop.eup %677  ;;  %v465_v62 = vmul.f32 %v463_v59, %v463_v59  ;;  %v447_v10 = vmul.f32 %v445_v2, %v439_v3  ;;  %v443_v24 = vmul.f32 %v441_v16, %v421_v48 }
 0x25d   :  { %v467_v61 = vmul.f32 %v678_v60, %v464_v49  ;;  %vm472_vm6 = vweird.f32 %v678_v60 }
 0x25e   :  { %679 = vrcp.f32 %v465_v62  ;;  %vm473_vm8 = vmor %vm471_vm7, %vm472_vm6  ;;  %v449_v20 = vmul.f32 %v447_v10, %v431_v47  ;;  %v490_v26 = vand.u32 2147483647, %v465_v62  ;;  %v492_v27 = vand.u32 2147483648, %v465_v62 }
 0x25f   :  { %v468_v1 = vsub.f32 1.0, %v467_v61  ;;  %vm486_vm11 = vweird.f32 %v465_v62 }
 0x260   :  { %v451_v28 = vadd.f32 %v449_v20, %v443_v24  ;;  %v493_v31 = vor.u32 1.1754944e-38, %v492_v27  ;;  %vm491_vm13 = vcmp.eq.f32.partialorder %v490_v26, 8.507059e+37 }
 0x261   :  { %v469_v6 = vmul.f32 %v678_v60, %v468_v1 }
 0x262   :  { %v457_v32 = vadd.f32 %v455_v30, %v451_v28 }
 0x263   :  { %v470_v9 = vadd.f32 %v678_v60, %v469_v6 }
 0x264   :  { %v680_v17 = vpop.eup %679 }
 0x265   :  { %v474_v14 = vsel %vm473_vm8, %v678_v60, %v470_v9  ;;  %v482_v21 = vmul.f32 %v680_v17, %v465_v62  ;;  %vm487_vm10 = vweird.f32 %v680_v17 }
 0x266   :  { %v479_v18 = vsel %vm476_vm9, %v478_v11, %v474_v14  ;;  %vm488_vm12 = vmor %vm486_vm11, %vm487_vm10 }
 0x267   :  { %v480_v19 = vmul.f32 %v479_v18, %v456_v13  ;;  %v483_v25 = vsub.f32 1.0, %v482_v21 }
 0x269   :  { %v496_v23 = vmax.f32 %v480_v19, 1e-30  ;;  %v484_v29 = vmul.f32 %v680_v17, %v483_v25 }
 0x26b   :  { %681 = vrsqrt.f32 %v496_v23  ;;  %v485_v12 = vadd.f32 %v680_v17, %v484_v29  ;;  %vm505_vm14 = vcmp.eq.f32.partialorder %v496_v23, inf  ;;  %v508_v47 = vand.u32 2147483648, %v496_v23 }
 0x26c   :  { %vm507_vm15 = vcmp.eq.f32.partialorder %v496_v23, 0.0 }
 0x26d   :  { %v489_v33 = vsel %vm488_vm12, %v680_v17, %v485_v12 }
 0x26e   :  { %v494_v34 = vsel %vm491_vm13, %v493_v31, %v489_v33 }
 0x26f   :  { %v495_v37 = vmul.f32 %v494_v34, %v457_v32 }
 0x271   :  { %v682_v35 = vpop.eup %681  ;;  %v497_v40 = vmax.f32 %v495_v37, 1e-30 }
 0x272   :  { %v499_v39 = vmul.f32 %v682_v35, %v496_v23 }
 0x273   :  { %683 = vrsqrt.f32 %v497_v40  ;;  %vm517_vm0 = vcmp.eq.f32.partialorder %v497_v40, inf  ;;  %v520_v57 = vand.u32 2147483648, %v497_v40  ;;  %vm519_vm1 = vcmp.eq.f32.partialorder %v497_v40, 0.0 }
 0x274   :  { %v500_v41 = vmul.f32 %v682_v35, %v499_v39 }
 0x276   :  { %v501_v42 = vmul.f32 0.5, %v500_v41 }
 0x278   :  { %v502_v43 = vsub.f32 1.5, %v501_v42 }
 0x279   :  { %v684_v44 = vpop.eup %683 }
 0x27a   :  { %v503_v15 = vmul.f32 %v682_v35, %v502_v43  ;;  %v511_v46 = vmul.f32 %v684_v44, %v497_v40 }
 0x27c   :  { %v504_v45 = vmul.f32 %v503_v15, %v496_v23  ;;  %v512_v49 = vmul.f32 %v684_v44, %v511_v46 }
 0x27e   :  { %v506_v48 = vsel %vm505_vm14, %v496_v23, %v504_v45  ;;  %v513_v52 = vmul.f32 0.5, %v512_v49 }
 0x27f   :  { %v509_v50 = vsel %vm507_vm15, %v508_v47, %v506_v48 }
 0x280   :  { %v522_v51 = vmax.f32 %v509_v50, 0.0  ;;  %v514_v53 = vsub.f32 1.5, %v513_v52 }
 0x282   :  { %v524_v36 = vmin.f32 %v522_v51, 0.9999999  ;;  %v515_v55 = vmul.f32 %v684_v44, %v514_v53 }
 0x284   :  { %v528_v54 = vsub.f32 1.0, %v524_v36  ;;  %v516_v56 = vmul.f32 %v515_v55, %v497_v40  ;;  %v526_v6 = vadd.f32 1.0, %v524_v36 }
 0x286   :  { %685 = vrcp.f32 %v528_v54  ;;  %v518_v58 = vsel %vm517_vm0, %v497_v40, %v516_v56  ;;  %v541_v1 = vand.u32 2147483648, %v528_v54  ;;  %v539_v3 = vand.u32 2147483647, %v528_v54 }
 0x287   :  { %v521_v59 = vsel %vm519_vm1, %v520_v57, %v518_v58  ;;  %vm535_vm3 = vweird.f32 %v528_v54 }
 0x288   :  { %v523_v60 = vmax.f32 %v521_v59, 0.0  ;;  %v542_v5 = vor.u32 1.1754944e-38, %v541_v1  ;;  %vm540_vm5 = vcmp.eq.f32.partialorder %v539_v3, 8.507059e+37 }
 0x28a   :  { %v525_v62 = vmin.f32 %v523_v60, 0.9999999 }
 0x28c   :  { %v686_v38 = vpop.eup %685  ;;  %v529_v0 = vsub.f32 1.0, %v525_v62  ;;  %v527_v22 = vadd.f32 1.0, %v525_v62 }
 0x28d   :  { %v531_v61 = vmul.f32 %v686_v38, %v528_v54  ;;  %vm536_vm2 = vweird.f32 %v686_v38 }
 0x28e   :  { %687 = vrcp.f32 %v529_v0  ;;  %vm537_vm4 = vmor %vm535_vm3, %vm536_vm2  ;;  %v556_v14 = vand.u32 2147483648, %v529_v0  ;;  %v554_v17 = vand.u32 2147483647, %v529_v0  ;;  %vm550_vm7 = vweird.f32 %v529_v0 }
 0x28f   :  { %v532_v63 = vsub.f32 1.0, %v531_v61 }
 0x290   :  { %v557_v20 = vor.u32 1.1754944e-38, %v556_v14  ;;  %vm555_vm9 = vcmp.eq.f32.partialorder %v554_v17, 8.507059e+37 }
 0x291   :  { %v533_v2 = vmul.f32 %v686_v38, %v532_v63 }
 0x293   :  { %v534_v4 = vadd.f32 %v686_v38, %v533_v2 }
 0x294   :  { %v688_v9 = vpop.eup %687 }
 0x295   :  { %v538_v7 = vsel %vm537_vm4, %v686_v38, %v534_v4  ;;  %v546_v11 = vmul.f32 %v688_v9, %v529_v0  ;;  %vm551_vm6 = vweird.f32 %v688_v9 }
 0x296   :  { %v543_v8 = vsel %vm540_vm5, %v542_v5, %v538_v7  ;;  %vm552_vm8 = vmor %vm550_vm7, %vm551_vm6 }
 0x297   :  { %v544_v10 = vmul.f32 %v543_v8, %v526_v6  ;;  %v547_v13 = vsub.f32 1.0, %v546_v11 }
 0x299   :  { %689 = vlog2.f32 %v544_v10  ;;  %v548_v16 = vmul.f32 %v688_v9, %v547_v13 }
 0x29b   :  { %v549_v18 = vadd.f32 %v688_v9, %v548_v16 }
 0x29d   :  { %v553_v23 = vsel %vm552_vm8, %v688_v9, %v549_v18 }
 0x29e   :  { %v558_v24 = vsel %vm555_vm9, %v557_v20, %v553_v23 }
 0x29f   :  { %v690_v19 = vpop.eup %689  ;;  %v559_v26 = vmul.f32 %v558_v24, %v527_v22 }
 0x2a0   :  { %v561_v21 = vmul.f32 0.6931472, %v690_v19 }
 0x2a1   :  { %691 = vlog2.f32 %v559_v26 }
 0x2a2   :  { %v564_v25 = vmul.f32 0.5, %v561_v21 }
 0x2a4   :  { %v566_v27 = vmul.f32 -4.0, %v564_v25 }
 0x2a6   :  { %v568_v28 = vmul.f32 %v566_v27, %v564_v25 }
 0x2a7   :  { %v692_v29 = vpop.eup %691 }
 0x2a8   :  { %572 = vperm.xlu2 %652, %v568_v28   ;;  %v563_v30 = vmul.f32 0.6931472, %v692_v29 }
 0x2aa   :  { %v565_v12 = vmul.f32 0.5, %v563_v30 }
 0x2ac   :  { %v567_v31 = vmul.f32 -4.0, %v565_v12 }
 0x2ae   :  { %v569_v32 = vmul.f32 %v567_v31, %v565_v12 }
 0x2b0   :  { %577 = vperm.xlu0 %650, %v569_v32  }
 0x302   :  { %v573_v33 = vpop.permute.xlu2 %572 }
 0x303   :  { %580 = vst [vmem:[#allocation11] sm:$0xff] %v573_v33 }
 0x322   :  { %v578_v34 = vpop.permute.xlu0 %577 }
 0x323   :  { %581 = vst [vmem:[#allocation11 + $0x8] sm:$0xff] %v578_v34 }
 0x324   :  { %594 = dma.vmem_to_hbm [thread:$0]  %s587_s30, 256, %s589_s10, [#allocation4], %s855_s11, %s855_s11, %s856_s12  }
 0x325   :  { %843 = dma.done.wait [#allocation4], 256  }
 0x326   :  { %844 = vsyncadd [#allocation4], 4294967040 }
 0x327   :  { %599 = vsyncpa [#allocation3], 1 }
 0x328   :  { %600 = vsyncpa [#allocation6], 1 }
 0x329   :  { %601 = vsyncpa [#allocation9], 1 }
 0x32a   :  { %602 = vsyncpa [#allocation4], 1 }

</bundles_post_ra>
